<compile_context>
chip_gen: v5e
topology: v5e:2x2
jax: 0.10.0
libtpu: 0.0.40
codegen_flags: <defaults>
</compile_context>

<pallas_src>
import functools
from typing import List, Tuple

import jax
import jax.numpy as jnp
from jax.experimental import pallas as pl
from jax.experimental.pallas import tpu as pltpu

LANE = 128
TB_MAX = 512  # batch-tile cap; review suggests sweeping 512-1024


def _round_up(x: int, m: int) -> int:
    return ((x + m - 1) // m) * m


# ----------------------------------------------------------------------------
# One-time probe: is pipeline_mode=pl.Buffered(1) (single-buffered grid-
# invariant blocks) supported by this JAX/Pallas build?  Falls back silently.
# ----------------------------------------------------------------------------
_BUFFERED_ONE_OK = None


def _buffered_one_supported() -> bool:
    global _BUFFERED_ONE_OK
    if _BUFFERED_ONE_OK is None:
        try:
            def _k(x_ref, o_ref):
                o_ref[...] = x_ref[...] + 1.0

            f = pl.pallas_call(
                _k,
                out_shape=jax.ShapeDtypeStruct((8, 128), jnp.float32),
                grid=(1,),
                in_specs=[pl.BlockSpec((8, 128), lambda i: (0, 0),
                                       pipeline_mode=pl.Buffered(1))],
                out_specs=pl.BlockSpec((8, 128), lambda i: (0, 0)),
            )
            jax.block_until_ready(f(jnp.zeros((8, 128), jnp.float32)))
            _BUFFERED_ONE_OK = True
        except Exception:
            _BUFFERED_ONE_OK = False
    return _BUFFERED_ONE_OK


# ----------------------------------------------------------------------------
# Kernel
# ----------------------------------------------------------------------------
def _make_mlp_kernel(num_layers: int, out_dim: int, normalize: bool):
    """Kernel refs = (x1, x2, w0_top, w0_bot, b0, [w_i, b_i]*, out)."""

    def kernel(*refs):
        x1_ref, x2_ref = refs[0], refs[1]
        w0t_ref, w0b_ref, b0_ref = refs[2], refs[3], refs[4]
        out_ref = refs[-1]
        rest = refs[5:-1]  # (w, b) pairs for layers 1..num_layers-1

        x1 = x1_ref[...].astype(jnp.float32)
        x2 = x2_ref[...].astype(jnp.float32)

        if normalize:
            # torch.nn.functional.normalize(x, dim=1): x / max(||x||_2, 1e-12)
            #   == x * min(rsqrt(sum(x^2)), 1e12).  rsqrt runs on the EUP slot.
            inv_eps = jnp.float32(1e12)
            s1 = jnp.sum(x1 * x1, axis=1, keepdims=True)
            s2 = jnp.sum(x2 * x2, axis=1, keepdims=True)
            x1 = x1 * jnp.minimum(jax.lax.rsqrt(s1), inv_eps)
            x2 = x2 * jnp.minimum(jax.lax.rsqrt(s2), inv_eps)

        # Layer 0 as a split GEMM (== concat(x1, x2) @ W0.T + b0): avoids the
        # cross-lane concat copy.  bf16 MXU inputs, f32 accumulation.
        h = (
            jnp.dot(x1.astype(jnp.bfloat16), w0t_ref[...],
                    preferred_element_type=jnp.float32)
            + jnp.dot(x2.astype(jnp.bfloat16), w0b_ref[...],
                      preferred_element_type=jnp.float32)
            + b0_ref[...]
        )
        h = jnp.tanh(h)

        # Remaining layers: h = tanh(h @ W.T + b)   (lane-padded dims)
        for i in range(num_layers - 1):
            w = rest[2 * i][...]        # bf16 (in_pad, out_pad)
            b = rest[2 * i + 1][...]    # f32  (1, out_pad)
            h = jnp.tanh(
                jnp.dot(h.astype(jnp.bfloat16), w,
                        preferred_element_type=jnp.float32) + b)

        # Narrow store: only the true out_dim columns hit HBM (cuts the
        # dominant writeback stream; padded columns were sigmoid(0) filler).
        out_ref[...] = jax.nn.sigmoid(h[:, :out_dim]).astype(out_ref.dtype)

    return kernel


# ----------------------------------------------------------------------------
# Parameters
# ----------------------------------------------------------------------------
def init_mlp_params(key, layers: List[int]) -> List[Tuple[jnp.ndarray, jnp.ndarray]]:
    """Xavier-uniform init (tanh gain = 5/3), bias zeros.

    Returns list of (weight_T, bias): weight_T shape (in, out) == W.T of the
    PyTorch nn.Linear (out, in) weight; bias shape (1, out).
    """
    params = []
    gain = 5.0 / 3.0
    for i in range(len(layers) - 1):
        fan_in, fan_out = layers[i], layers[i + 1]
        key, sub = jax.random.split(key)
        bound = gain * jnp.sqrt(6.0 / (fan_in + fan_out))
        w_t = jax.random.uniform(
            sub, (fan_in, fan_out), minval=-bound, maxval=bound, dtype=jnp.float32
        )
        b = jnp.zeros((1, fan_out), dtype=jnp.float32)
        params.append((w_t, b))
    return params


def prepare_params(params, d1: int):
    """One-time packing (hoisted out of the forward path).

    Pads every layer's output dim to a multiple of 128 (lane-dense matmuls),
    splits the layer-0 weight at row d1 so the kernel never concatenates
    x1/x2, and casts weights to bf16 (biases stay f32).

    Returns (flat_params, out_dim) where flat_params =
      (w0_top bf16 (d1, h0p), w0_bot bf16 (d2, h0p), b0 f32 (1, h0p),
       w1 bf16, b1 f32, ..., w_{L-1} bf16, b_{L-1} f32)
    """
    num_layers = len(params)
    out_dim = int(params[-1][0].shape[1])
    padded_out = [_round_up(p[0].shape[1], LANE) for p in params]

    flat = []
    w0, b0 = params[0]
    h0p = padded_out[0]
    w0p = jnp.zeros((w0.shape[0], h0p), jnp.float32).at[:, : w0.shape[1]].set(w0)
    flat.append(w0p[:d1, :].astype(jnp.bfloat16))   # w0_top  (d1, h0p)
    flat.append(w0p[d1:, :].astype(jnp.bfloat16))   # w0_bot  (d2, h0p)
    flat.append(jnp.zeros((1, h0p), jnp.float32).at[:, : b0.shape[1]].set(b0))

    for li in range(1, num_layers):
        w, b = params[li]
        in_p, out_p = padded_out[li - 1], padded_out[li]
        wp = jnp.zeros((in_p, out_p), jnp.float32).at[: w.shape[0], : w.shape[1]].set(w)
        bp = jnp.zeros((1, out_p), jnp.float32).at[:, : b.shape[1]].set(b)
        flat.append(wp.astype(jnp.bfloat16))
        flat.append(bp)

    # Run the single-buffering probe once here (plain Python, outside any jit).
    _buffered_one_supported()
    return tuple(flat), out_dim


# ----------------------------------------------------------------------------
# Forward
# ----------------------------------------------------------------------------
@functools.partial(jax.jit, static_argnames=("out_dim", "normalize"))
def mlp_forward(x1, x2, flat_params, out_dim: int, normalize: bool = False):
    """Matches MLP.forward(x1, x2, normalize).  flat_params from prepare_params."""
    num_layers = (len(flat_params) - 3) // 2 + 1
    B, d1 = x1.shape
    d2 = x2.shape[1]

    # ---- batch tile selection ----------------------------------------------
    # Big tiles amortize per-grid-step overhead (mem-/overhead-bound regime);
    # cap so there are >=2 grid steps whenever possible so the "parallel"
    # batch axis can shard across both TensorCores on v7x.
    if B < 8:
        TB = B                                    # block == full dim (legal)
    else:
        TB = max(8, min(TB_MAX, _round_up(pl.cdiv(B, 2), 8)))
    grid = (pl.cdiv(B, TB),)   # ragged last block: OOB rows read garbage
                               # (row-local only) and their stores are dropped.

    # ---- specs ---------------------------------------------------------------
    use_single_buffered = _BUFFERED_ONE_OK is True
    weight_spec_kw = (dict(pipeline_mode=pl.Buffered(1))
                      if use_single_buffered else {})

    in_specs = [
        pl.BlockSpec((TB, d1), lambda i: (i, 0)),   # activation tiles stream
        pl.BlockSpec((TB, d2), lambda i: (i, 0)),
    ]
    for p in flat_params:                           # weights/biases VMEM-resident
        in_specs.append(pl.BlockSpec(p.shape, lambda i: (0, 0), **weight_spec_kw))

    # ---- explicit VMEM budget ------------------------------------------------
    weight_mult = 1 if use_single_buffered else 2
    weight_bytes = sum(int(p.size) * p.dtype.itemsize for p in flat_params)
    max_hidden_p = max(int(p.shape[-1]) for p in flat_params)
    act_bytes = 2 * TB * (d1 + d2) * 4          # double-buffered f32 input tiles
    out_bytes = 2 * TB * max(out_dim, 1) * 4    # double-buffered f32 output tile
    live_bytes = 4 * TB * max_hidden_p * 4      # live f32 intermediates + slack
    vmem_limit = int(min(
        128 << 20,
        max(32 << 20,
            2 * (weight_mult * weight_bytes + act_bytes + out_bytes + live_bytes))))

    kernel = _make_mlp_kernel(num_layers, out_dim, normalize)

    out = pl.pallas_call(
        kernel,
        out_shape=jax.ShapeDtypeStruct((B, out_dim), jnp.float32),
        grid=grid,
        in_specs=in_specs,
        out_specs=pl.BlockSpec((TB, out_dim), lambda i: (i, 0)),
        compiler_params=pltpu.CompilerParams(
            dimension_semantics=("parallel",),
            vmem_limit_bytes=vmem_limit),
    )(x1, x2, *flat_params)

    return out   # exactly (B, out_dim): no wrapper-side slicing needed


# ----------------------------------------------------------------------------
# Reference
# ----------------------------------------------------------------------------
def mlp_reference(x1, x2, params, normalize: bool = False):
    """Pure-JAX f32 reference matching the PyTorch forward semantics."""
    if normalize:
        eps = 1e-12
        x1 = x1 / jnp.maximum(jnp.linalg.norm(x1, axis=1, keepdims=True), eps)
        x2 = x2 / jnp.maximum(jnp.linalg.norm(x2, axis=1, keepdims=True), eps)
    x = jnp.concatenate([x1, x2], axis=1)
    for w_t, b in params:
        x = jnp.tanh(x @ w_t + b)
    return jax.nn.sigmoid(x)


if __name__ == "__main__":
    key = jax.random.PRNGKey(0)
    k1, k2, kp = jax.random.split(key, 3)

    batch, d1, d2 = 8, 16, 16
    layers = [d1 + d2, 64, 32, 16]  # concat dim must equal layers[0]

    x1 = jax.random.normal(k1, (batch, d1), dtype=jnp.float32)
    x2 = jax.random.normal(k2, (batch, d2), dtype=jnp.float32)
    params = init_mlp_params(kp, layers)
    flat_params, out_dim = prepare_params(params, d1)   # one-time packing

    out = jax.block_until_ready(
        mlp_forward(x1, x2, flat_params, out_dim=out_dim, normalize=False))
    out_norm = jax.block_until_ready(
        mlp_forward(x1, x2, flat_params, out_dim=out_dim, normalize=True))

    ref = mlp_reference(x1, x2, params, normalize=False)
    ref_norm = mlp_reference(x1, x2, params, normalize=True)

    assert out.shape == (batch, layers[-1])
    # bf16 MXU inputs with f32 accumulation -> relaxed tolerance vs f32 ref.
    assert jnp.allclose(out, ref, atol=2e-2), "mismatch vs reference (normalize=False)"
    assert jnp.allclose(out_norm, ref_norm, atol=2e-2), "mismatch vs reference (normalize=True)"

    # Ragged final block (B not a multiple of the batch tile): garbage rows are
    # computed in-kernel but their stores are dropped.
    k3, k4 = jax.random.split(k1)
    xb1 = jax.random.normal(k3, (13, d1), dtype=jnp.float32)
    xb2 = jax.random.normal(k4, (13, d2), dtype=jnp.float32)
    out13 = jax.block_until_ready(
        mlp_forward(xb1, xb2, flat_params, out_dim=out_dim, normalize=True))
    ref13 = mlp_reference(xb1, xb2, params, normalize=True)
    assert out13.shape == (13, layers[-1])
    assert jnp.allclose(out13, ref13, atol=2e-2), "mismatch vs reference (batch=13)"

    # Larger batch: exercises grid > 1 (two 'parallel' tiles) + ragged last tile.
    k5, k6 = jax.random.split(k2)
    xc1 = jax.random.normal(k5, (300, d1), dtype=jnp.float32)
    xc2 = jax.random.normal(k6, (300, d2), dtype=jnp.float32)
    out300 = jax.block_until_ready(
        mlp_forward(xc1, xc2, flat_params, out_dim=out_dim, normalize=False))
    ref300 = mlp_reference(xc1, xc2, params, normalize=False)
    assert out300.shape == (300, layers[-1])
    assert jnp.allclose(out300, ref300, atol=2e-2), "mismatch vs reference (batch=300)"

    print("KERNEL_OK")
</pallas_src>

<mosaic_0001>
module attributes {stable_mosaic.version = 11 : i64} {
  func.func @_k(%arg0: i32, %arg1: memref<8x128xf32, #tpu.memory_space<vmem>>, %arg2: memref<8x128xf32, #tpu.memory_space<vmem>>) attributes {dimension_semantics = [#tpu.dimension_semantics<arbitrary>], iteration_bounds = array<i64: 1>, scalar_prefetch = 0 : i64, scratch_operands = 0 : i64, tpu.core_type = #tpu.core_type<tc>, window_params = [{pipeline_mode = #tpu.pipeline_mode<synchronous>, transform_indices = @transform_0, window_bounds = array<i64: 8, 128>}, {pipeline_mode = #tpu.pipeline_mode<synchronous>, transform_indices = @transform_1, window_bounds = array<i64: 8, 128>}]} {
    %c0 = arith.constant 0 : index
    %c0_0 = arith.constant 0 : index
    %0 = vector.load %arg1[%c0, %c0_0] : memref<8x128xf32, #tpu.memory_space<vmem>>, vector<8x128xf32>
    %cst = arith.constant 1.000000e+00 : f32
    %1 = vector.broadcast %cst : f32 to vector<8x128xf32>
    %2 = arith.addf %0, %1 : vector<8x128xf32>
    %c0_1 = arith.constant 0 : index
    %c0_2 = arith.constant 0 : index
    %3 = vector.load %arg2[%c0_1, %c0_2] : memref<8x128xf32, #tpu.memory_space<vmem>>, vector<8x128xf32>
    tpu.vector_store %arg2[%c0_1, %c0_2], %2 {strides = array<i32>} : memref<8x128xf32, #tpu.memory_space<vmem>>, vector<8x128xf32>,
    return
  }
  func.func @transform_0(%arg0: i32) -> (i32, i32) {
    %c0_i32 = arith.constant 0 : i32
    %c0_i32_0 = arith.constant 0 : i32
    %c0_i32_1 = arith.constant 0 : i32
    return %c0_i32, %c0_i32_0 : i32, i32
  }
  func.func @transform_1(%arg0: i32) -> (i32, i32) {
    %c0_i32 = arith.constant 0 : i32
    %c0_i32_0 = arith.constant 0 : i32
    %c0_i32_1 = arith.constant 0 : i32
    return %c0_i32, %c0_i32_0 : i32, i32
  }
}

module attributes {stable_mosaic.version = 11 : i64} {
  func.func @kernel(%arg0: i32, %arg1: memref<8x16xf32, #tpu.memory_space<vmem>>, %arg2: memref<8x16xf32, #tpu.memory_space<vmem>>, %arg3: memref<16x128xbf16, #tpu.memory_space<vmem>>, %arg4: memref<16x128xbf16, #tpu.memory_space<vmem>>, %arg5: memref<1x128xf32, #tpu.memory_space<vmem>>, %arg6: memref<128x128xbf16, #tpu.memory_space<vmem>>, %arg7: memref<1x128xf32, #tpu.memory_space<vmem>>, %arg8: memref<128x128xbf16, #tpu.memory_space<vmem>>, %arg9: memref<1x128xf32, #tpu.memory_space<vmem>>, %arg10: memref<8x16xf32, #tpu.memory_space<vmem>>) attributes {dimension_semantics = [#tpu.dimension_semantics<parallel>], iteration_bounds = array<i64: 1>, scalar_prefetch = 0 : i64, scratch_operands = 0 : i64, tpu.core_type = #tpu.core_type<tc>, window_params = [{transform_indices = @transform_0, window_bounds = array<i64: 8, 16>}, {transform_indices = @transform_1, window_bounds = array<i64: 8, 16>}, {pipeline_mode = #tpu.pipeline_mode<synchronous>, transform_indices = @transform_2, window_bounds = array<i64: 16, 128>}, {pipeline_mode = #tpu.pipeline_mode<synchronous>, transform_indices = @transform_3, window_bounds = array<i64: 16, 128>}, {pipeline_mode = #tpu.pipeline_mode<synchronous>, transform_indices = @transform_4, window_bounds = array<i64: 1, 128>}, {pipeline_mode = #tpu.pipeline_mode<synchronous>, transform_indices = @transform_5, window_bounds = array<i64: 128, 128>}, {pipeline_mode = #tpu.pipeline_mode<synchronous>, transform_indices = @transform_6, window_bounds = array<i64: 1, 128>}, {pipeline_mode = #tpu.pipeline_mode<synchronous>, transform_indices = @transform_7, window_bounds = array<i64: 128, 128>}, {pipeline_mode = #tpu.pipeline_mode<synchronous>, transform_indices = @transform_8, window_bounds = array<i64: 1, 128>}, {transform_indices = @transform_9, window_bounds = array<i64: 8, 16>}]} {
    %c0 = arith.constant 0 : index
    %c0_0 = arith.constant 0 : index
    %0 = vector.load %arg1[%c0, %c0_0] : memref<8x16xf32, #tpu.memory_space<vmem>>, vector<8x16xf32>
    %c0_1 = arith.constant 0 : index
    %c0_2 = arith.constant 0 : index
    %1 = vector.load %arg2[%c0_1, %c0_2] : memref<8x16xf32, #tpu.memory_space<vmem>>, vector<8x16xf32>
    %2 = arith.truncf %0 : vector<8x16xf32> to vector<8x16xbf16>
    %c0_3 = arith.constant 0 : index
    %c0_4 = arith.constant 0 : index
    %3 = vector.load %arg3[%c0_3, %c0_4] : memref<16x128xbf16, #tpu.memory_space<vmem>>, vector<16x128xbf16>
    %cst = arith.constant dense<0.000000e+00> : vector<8x128xf32>
    %4 = tpu.matmul %2, %3, %cst {dimension_numbers = #tpu.dot_dimension_numbers<[1], [0], [0], [1], [0, 0, 1, 1], [], []>} : vector<8x16xbf16>, vector<16x128xbf16>, vector<8x128xf32> -> vector<8x128xf32>
    %5 = arith.truncf %1 : vector<8x16xf32> to vector<8x16xbf16>
    %c0_5 = arith.constant 0 : index
    %c0_6 = arith.constant 0 : index
    %6 = vector.load %arg4[%c0_5, %c0_6] : memref<16x128xbf16, #tpu.memory_space<vmem>>, vector<16x128xbf16>
    %cst_7 = arith.constant dense<0.000000e+00> : vector<8x128xf32>
    %7 = tpu.matmul %5, %6, %cst_7 {dimension_numbers = #tpu.dot_dimension_numbers<[1], [0], [0], [1], [0, 0, 1, 1], [], []>} : vector<8x16xbf16>, vector<16x128xbf16>, vector<8x128xf32> -> vector<8x128xf32>
    %8 = arith.addf %4, %7 : vector<8x128xf32>
    %c0_8 = arith.constant 0 : index
    %c0_9 = arith.constant 0 : index
    %9 = vector.load %arg5[%c0_8, %c0_9] : memref<1x128xf32, #tpu.memory_space<vmem>>, vector<1x128xf32>
    %10 = vector.broadcast %9 : vector<1x128xf32> to vector<8x128xf32>
    %11 = arith.addf %8, %10 : vector<8x128xf32>
    %12 = math.tanh %11 : vector<8x128xf32>
    %c0_10 = arith.constant 0 : index
    %c0_11 = arith.constant 0 : index
    %13 = vector.load %arg6[%c0_10, %c0_11] : memref<128x128xbf16, #tpu.memory_space<vmem>>, vector<128x128xbf16>
    %c0_12 = arith.constant 0 : index
    %c0_13 = arith.constant 0 : index
    %14 = vector.load %arg7[%c0_12, %c0_13] : memref<1x128xf32, #tpu.memory_space<vmem>>, vector<1x128xf32>
    %15 = arith.truncf %12 : vector<8x128xf32> to vector<8x128xbf16>
    %cst_14 = arith.constant dense<0.000000e+00> : vector<8x128xf32>
    %16 = tpu.matmul %15, %13, %cst_14 {dimension_numbers = #tpu.dot_dimension_numbers<[1], [0], [0], [1], [0, 0, 1, 1], [], []>} : vector<8x128xbf16>, vector<128x128xbf16>, vector<8x128xf32> -> vector<8x128xf32>
    %17 = vector.broadcast %14 : vector<1x128xf32> to vector<8x128xf32>
    %18 = arith.addf %16, %17 : vector<8x128xf32>
    %19 = math.tanh %18 : vector<8x128xf32>
    %c0_15 = arith.constant 0 : index
    %c0_16 = arith.constant 0 : index
    %20 = vector.load %arg8[%c0_15, %c0_16] : memref<128x128xbf16, #tpu.memory_space<vmem>>, vector<128x128xbf16>
    %c0_17 = arith.constant 0 : index
    %c0_18 = arith.constant 0 : index
    %21 = vector.load %arg9[%c0_17, %c0_18] : memref<1x128xf32, #tpu.memory_space<vmem>>, vector<1x128xf32>
    %22 = arith.truncf %19 : vector<8x128xf32> to vector<8x128xbf16>
    %cst_19 = arith.constant dense<0.000000e+00> : vector<8x128xf32>
    %23 = tpu.matmul %22, %20, %cst_19 {dimension_numbers = #tpu.dot_dimension_numbers<[1], [0], [0], [1], [0, 0, 1, 1], [], []>} : vector<8x128xbf16>, vector<128x128xbf16>, vector<8x128xf32> -> vector<8x128xf32>
    %24 = vector.broadcast %21 : vector<1x128xf32> to vector<8x128xf32>
    %25 = arith.addf %23, %24 : vector<8x128xf32>
    %26 = math.tanh %25 : vector<8x128xf32>
    %27 = vector.extract_strided_slice %26 {offsets = [0, 0], sizes = [8, 16], strides = [1, 1]} : vector<8x128xf32> to vector<8x16xf32>
    %28 = arith.negf %27 : vector<8x16xf32>
    %29 = math.exp %28 : vector<8x16xf32>
    %cst_20 = arith.constant 1.000000e+00 : f32
    %30 = vector.broadcast %cst_20 : f32 to vector<8x16xf32>
    %31 = arith.addf %30, %29 : vector<8x16xf32>
    %32 = arith.divf %30, %31 : vector<8x16xf32>
    %c0_21 = arith.constant 0 : index
    %c0_22 = arith.constant 0 : index
    %33 = vector.load %arg10[%c0_21, %c0_22] : memref<8x16xf32, #tpu.memory_space<vmem>>, vector<8x16xf32>
    tpu.vector_store %arg10[%c0_21, %c0_22], %32 {strides = array<i32>} : memref<8x16xf32, #tpu.memory_space<vmem>>, vector<8x16xf32>,
    return
  }
  func.func @transform_0(%arg0: i32) -> (i32, i32) {
    %c0_i32 = arith.constant 0 : i32
    %c0_i32_0 = arith.constant 0 : i32
    return %arg0, %c0_i32 : i32, i32
  }
  func.func @transform_1(%arg0: i32) -> (i32, i32) {
    %c0_i32 = arith.constant 0 : i32
    %c0_i32_0 = arith.constant 0 : i32
    return %arg0, %c0_i32 : i32, i32
  }
  func.func @transform_2(%arg0: i32) -> (i32, i32) {
    %c0_i32 = arith.constant 0 : i32
    %c0_i32_0 = arith.constant 0 : i32
    %c0_i32_1 = arith.constant 0 : i32
    return %c0_i32, %c0_i32_0 : i32, i32
  }
  func.func @transform_3(%arg0: i32) -> (i32, i32) {
    %c0_i32 = arith.constant 0 : i32
    %c0_i32_0 = arith.constant 0 : i32
    %c0_i32_1 = arith.constant 0 : i32
    return %c0_i32, %c0_i32_0 : i32, i32
  }
  func.func @transform_4(%arg0: i32) -> (i32, i32) {
    %c0_i32 = arith.constant 0 : i32
    %c0_i32_0 = arith.constant 0 : i32
    %c0_i32_1 = arith.constant 0 : i32
    return %c0_i32, %c0_i32_0 : i32, i32
  }
  func.func @transform_5(%arg0: i32) -> (i32, i32) {
    %c0_i32 = arith.constant 0 : i32
    %c0_i32_0 = arith.constant 0 : i32
    %c0_i32_1 = arith.constant 0 : i32
    return %c0_i32, %c0_i32_0 : i32, i32
  }
  func.func @transform_6(%arg0: i32) -> (i32, i32) {
    %c0_i32 = arith.constant 0 : i32
    %c0_i32_0 = arith.constant 0 : i32
    %c0_i32_1 = arith.constant 0 : i32
    return %c0_i32, %c0_i32_0 : i32, i32
  }
  func.func @transform_7(%arg0: i32) -> (i32, i32) {
    %c0_i32 = arith.constant 0 : i32
    %c0_i32_0 = arith.constant 0 : i32
    %c0_i32_1 = arith.constant 0 : i32
    return %c0_i32, %c0_i32_0 : i32, i32
  }
  func.func @transform_8(%arg0: i32) -> (i32, i32) {
    %c0_i32 = arith.constant 0 : i32
    %c0_i32_0 = arith.constant 0 : i32
    %c0_i32_1 = arith.constant 0 : i32
    return %c0_i32, %c0_i32_0 : i32, i32
  }
  func.func @transform_9(%arg0: i32) -> (i32, i32) {
    %c0_i32 = arith.constant 0 : i32
    %c0_i32_0 = arith.constant 0 : i32
    return %arg0, %c0_i32 : i32, i32
  }
}

</mosaic_0001>

<bundles_post_ra>
// kernel: tpu_custom_call.1
= control target key start
LH: loop header
LB: loop body
LE: loop exit
PB: predicated region body
PF: predicated region fallthrough
CT: control target
= control target key end

     0   :  { %6 = vsyncpa [#allocation3], 0  ;;  %s115_s0 = inlined_call_operand.hbm [shape: f32[8,128], index: 0, kind: input, shape index: {}]   ;;  %s116_s1 = inlined_call_operand.hbm [shape: f32[8,128], index: 1, kind: output, shape index: {}]  }
   0x1   :  { %7 = vsyncpa [#allocation4], 0  ;;  %s13_s8 = sshll.u32 %s115_s0, 4  ;;  %s97_s9 = smov [#allocation2]   ;;  %s14_s8 = int_to_ptr.hbm [resolvable:$true] %s13_s8 }
   0x2   :  { %s15_s10 = sshll.u32 %s97_s9, 4  ;;  %s16_s10 = int_to_ptr.vmem [resolvable:$true] %s15_s10 }
   0x3   :  { %18 = dma.hbm_to_vmem [thread:$0]  %s14_s8, 128, %s16_s10, [#allocation3]  }
   0x4   :  { %93 = dma.done.wait [#allocation3], 128  }
   0x5   :  { %94 = vsyncadd [#allocation3], 4294967168  ;;  %s98_s11 = smov [#allocation5]   ;;  %s33_s15 = sshll.u32 %s116_s1, 4  ;;  %v23_v0 = vld [vmem:[#allocation2] sm:$0xff]  ;;  %s34_s15 = int_to_ptr.hbm [resolvable:$true] %s33_s15 }
   0x6   :  { %s31_s12 = sshll.u32 %s98_s11, 4  ;;  %v24_v1 = vadd.f32 1.0, %v23_v0  ;;  %s32_s12 = int_to_ptr.vmem [resolvable:$true] %s31_s12 }
   0x8   :  { %25 = vst [vmem:[#allocation5] sm:$0xff] %v24_v1 }
   0x9   :  { %36 = dma.vmem_to_hbm [thread:$0]  %s32_s12, 128, %s34_s15, [#allocation4]  }
   0xa   :  { %95 = dma.done.wait [#allocation4], 128  }
   0xb   :  { %96 = vsyncadd [#allocation4], 4294967168 }
   0xc   :  { %41 = vsyncpa [#allocation3], 1 }
   0xd   :  { %42 = vsyncpa [#allocation4], 1 }

// kernel: mlp_forward.1
= control target key start
LH: loop header
LB: loop body
LE: loop exit
PB: predicated region body
PF: predicated region fallthrough
CT: control target
= control target key end

     0   :  { %14 = vsyncpa [#allocation3], 0  ;;  %s774_s0 = inlined_call_operand.hbm [shape: f32[8,16], index: 0, kind: input, shape index: {}]   ;;  %s775_s1 = inlined_call_operand.hbm [shape: f32[8,16], index: 1, kind: input, shape index: {}]   ;;  %s776_s2 = inlined_call_operand.hbm [shape: bf16[16,128], index: 2, kind: input, shape index: {}]   ;;  %s777_s3 = inlined_call_operand.hbm [shape: bf16[16,128], index: 3, kind: input, shape index: {}]   ;;  %s778_s4 = inlined_call_operand.vmem [shape: f32[1,128], index: 4, kind: input, shape index: {}]   ;;  %s779_s5 = inlined_call_operand.hbm [shape: bf16[128,128], index: 5, kind: input, shape index: {}]   ;;  %s780_s6 = inlined_call_operand.vmem [shape: f32[1,128], index: 6, kind: input, shape index: {}]   ;;  %s781_s7 = inlined_call_operand.hbm [shape: bf16[128,128], index: 7, kind: input, shape index: {}]   ;;  %s782_s8 = inlined_call_operand.vmem [shape: f32[1,128], index: 8, kind: input, shape index: {}]   ;;  %s783_s9 = inlined_call_operand.hbm [shape: f32[8,16], index: 9, kind: output, shape index: {}]  }
   0x1   :  { %15 = vsyncpa [#allocation6], 0 }
   0x2   :  { %16 = vsyncpa [#allocation9], 0 }
   0x3   :  { %17 = vsyncpa [#allocation12], 0  ;;  %s35_s11 = sshll.u32 %s775_s1, 4  ;;  %s36_s11 = int_to_ptr.hbm [resolvable:$true] %s35_s11 }
   0x4   :  { %18 = vsyncpa [#allocation4], 0  ;;  %s682_s12 = smov [#allocation5]   ;;  %s58_s16 = sshll.u32 %s777_s3, 4  ;;  %s59_s16 = int_to_ptr.hbm [resolvable:$true] %s58_s16 }
   0x5   :  { %s37_s13 = sshll.u32 %s682_s12, 4  ;;  %s683_s17 = smov [#allocation8]   ;;  %s38_s13 = int_to_ptr.vmem [resolvable:$true] %s37_s13 }
   0x6   :  { %40 = dma.hbm_to_vmem [thread:$0]  %s36_s11, 128, %s38_s13, [#allocation6]  }
   0x7   :  { %s60_s18 = sshll.u32 %s683_s17, 4  ;;  %s24_s21 = sshll.u32 %s774_s0, 4  ;;  %s61_s18 = int_to_ptr.vmem [resolvable:$true] %s60_s18  ;;  %s25_s21 = int_to_ptr.hbm [resolvable:$true] %s24_s21 }
   0x8   :  { %s684_s1 = smov 64   ;;  %s685_s22 = smov 4  }
   0x9   :  { %66 = dma.hbm_to_vmem [thread:$0]  %s59_s16, 128, %s61_s18, [#allocation9], %s684_s1, %s684_s1, %s685_s22  }
   0xa   :  { %s45_s25 = sshll.u32 %s776_s2, 4  ;;  %s686_s26 = smov [#allocation2]   ;;  %s46_s25 = int_to_ptr.hbm [resolvable:$true] %s45_s25 }
   0xb   :  { %s26_s27 = sshll.u32 %s686_s26, 4  ;;  %s687_s3 = smov [#allocation7]   ;;  %s27_s27 = int_to_ptr.vmem [resolvable:$true] %s26_s27 }
   0xc   :  { %29 = dma.hbm_to_vmem [thread:$0]  %s25_s21, 128, %s27_s27, [#allocation3]  }
   0xd   :  { %s47_s28 = sshll.u32 %s687_s3, 4  ;;  %s73_s0 = sshll.u32 %s779_s5, 4  ;;  %s48_s28 = int_to_ptr.vmem [resolvable:$true] %s47_s28  ;;  %s74_s0 = int_to_ptr.hbm [resolvable:$true] %s73_s0 }
   0xe   :  { %53 = dma.hbm_to_vmem [thread:$0]  %s46_s25, 128, %s48_s28, [#allocation6], %s684_s1, %s684_s1, %s685_s22  }
   0xf   :  { %s88_s12 = sshll.u32 %s781_s7, 4  ;;  %s688_s13 = smov [#allocation10]   ;;  %s89_s12 = int_to_ptr.hbm [resolvable:$true] %s88_s12 }
  0x10   :  { %s75_s2 = sshll.u32 %s688_s13, 4  ;;  %s689_s14 = smov [#allocation11]   ;;  %s76_s2 = int_to_ptr.vmem [resolvable:$true] %s75_s2 }
  0x11   :  { %81 = dma.hbm_to_vmem [thread:$0]  %s74_s0, 1024, %s76_s2, [#allocation9], %s684_s1, %s684_s1, %s685_s22  }
  0x12   :  { %s90_s15 = sshll.u32 %s689_s14, 4  ;;  %s91_s15 = int_to_ptr.vmem [resolvable:$true] %s90_s15 }
  0x13   :  { %96 = dma.hbm_to_vmem [thread:$0]  %s89_s12, 1024, %s91_s15, [#allocation12], %s684_s1, %s684_s1, %s685_s22  }
  0x14   :  { %672 = dma.done.wait [#allocation3], 128  }
  0x15   :  { %673 = vsyncadd [#allocation3], 4294967168 }
  0x16   :  { %674 = dma.done.wait [#allocation6], 256  }
  0x17   :  { %675 = vsyncadd [#allocation6], 4294967040 }
  0x18   :  { %676 = dma.done.wait [#allocation9], 1152  }
  0x19   :  { %677 = vsyncadd [#allocation9], 4294966144 }
  0x1a   :  { %678 = dma.done.wait [#allocation12], 1024  }
  0x1b   :  { %679 = vsyncadd [#allocation12], 4294966272  ;;  %v465_v0 = vld [vmem:[#allocation8] sm:$0xff]  ;;  %v464_v1 = vld [vmem:[#allocation7] sm:$0xff]  ;;  %vm138_vm0 = vcmask 130048   ;;  %s376_s21 = sshll.u32 %s783_s9, 4  ;;  %s377_s21 = int_to_ptr.hbm [resolvable:$true] %s376_s21 }
  0x1c   :  { %v125_v2 = vld [vmem:[#allocation5] sm:$0xff]  ;;  %v124_v4 = vld [vmem:[#allocation2] sm:$0xff]  ;;  %v473_v5 = vld [vmem:[#allocation10 + $0x38] sm:$0xff]  ;;  %149 = vmatpush.bf16.msra.mxu0 %v465_v0  ;;  %171 = vmatpush.bf16.msra.mxu1 %v464_v1 }
  0x1d   :  { %v129_v3 = vpack.c.bf16 %v125_v2, %v125_v2  ;;  %v126_v6 = vpack.c.bf16 %v124_v4, %v124_v4  ;;  %v472_v7 = vld [vmem:[#allocation10 + $0x30] sm:$0xff]  ;;  %252 = vmatpush.bf16.msra.mxu2 %v473_v5  ;;  %v471_v8 = vld [vmem:[#allocation10 + $0x28] sm:$0xff]  ;;  %v470_v9 = vld [vmem:[#allocation10 + $0x20] sm:$0xff] }
  0x1e   :  { %v469_v10 = vld [vmem:[#allocation10 + $0x18] sm:$0xff]  ;;  %v468_v11 = vld [vmem:[#allocation10 + $0x10] sm:$0xff]  ;;  %v467_v12 = vld [vmem:[#allocation10 + $0x8] sm:$0xff] }
  0x1f   :  { %393 = vmatmul.msk.bf16.vlgmr.msra.gmra.mxu0 %vm138_vm0, %v129_v3  ;;  %398 = vmatmul.msk.bf16.vlgmr.msra.gmra.mxu1 %vm138_vm0, %v126_v6  ;;  %v466_v13 = vld [vmem:[#allocation10] sm:$0xff]  ;;  %v481_v14 = vld [vmem:[#allocation11 + $0x38] sm:$0xff]  ;;  %v480_v15 = vld [vmem:[#allocation11 + $0x30] sm:$0xff] }
  0x20   :  { %335 = vmatpush.bf16.msra.mxu3 %v481_v14  ;;  %v479_v16 = vld [vmem:[#allocation11 + $0x28] sm:$0xff]  ;;  %v478_v17 = vld [vmem:[#allocation11 + $0x20] sm:$0xff]  ;;  %v477_v18 = vld [vmem:[#allocation11 + $0x18] sm:$0xff] }
  0x21   :  { %253 = vmatpush.bf16.msra.mxu2 %v472_v7  ;;  %v491_v19 = vld [vmem:[%s778_s4] ss:$0 sm:$0xff]  ;;  %v476_v28 = vld [vmem:[#allocation11 + $0x10] sm:$0xff]  ;;  %v475_v29 = vld [vmem:[#allocation11 + $0x8] sm:$0xff] }
  0x22   :  { %v474_v30 = vld [vmem:[#allocation11] sm:$0xff] }
  0x23   :  { %v492_v31 = vld [vmem:[%s780_s6] ss:$0 sm:$0xff]  ;;  %s690_s6 = smov [#allocation13]  }
  0x24   :  { %336 = vmatpush.bf16.msra.mxu3 %v480_v15  ;;  %v493_v37 = vld [vmem:[%s782_s8] ss:$0 sm:$0xff]  ;;  %s374_s19 = sshll.u32 %s690_s6, 4  ;;  %s375_s19 = int_to_ptr.vmem [resolvable:$true] %s374_s19 }
  0x25   :  { %254 = vmatpush.bf16.msra.mxu2 %v471_v8 }
  0x28   :  { %337 = vmatpush.bf16.msra.mxu3 %v479_v16 }
  0x29   :  { %255 = vmatpush.bf16.msra.mxu2 %v470_v9 }
  0x2c   :  { %338 = vmatpush.bf16.msra.mxu3 %v478_v17 }
  0x2d   :  { %256 = vmatpush.bf16.msra.mxu2 %v469_v10 }
  0x30   :  { %339 = vmatpush.bf16.msra.mxu3 %v477_v18 }
  0x31   :  { %257 = vmatpush.bf16.msra.mxu2 %v468_v11 }
  0x34   :  { %340 = vmatpush.bf16.msra.mxu3 %v476_v28 }
  0x35   :  { %258 = vmatpush.bf16.msra.mxu2 %v467_v12 }
  0x38   :  { %341 = vmatpush.bf16.msra.mxu3 %v475_v29 }
  0x39   :  { %259 = vmatpush.bf16.msra.mxu2 %v466_v13 }
  0x3c   :  { %342 = vmatpush.bf16.msra.mxu3 %v474_v30 }
  0x9c   :  { %v151_v20 = vpop.f32.mrf.mxu0  ;;  %v173_v21 = vpop.f32.mrf.mxu1 }
  0x9d   :  { %v174_v22 = vadd.f32 %v173_v21, %v151_v20 }
  0x9f   :  { %v181_v23 = vadd.f32 %v491_v19, %v174_v22 }
  0xa1   :  { %494 = vtanh.f32 %v181_v23 }
  0xa4   :  { %v153_v24 = vpop.f32.mrf.mxu0  ;;  %v175_v25 = vpop.f32.mrf.mxu1 }
  0xa7   :  { %v495_v26 = vpop.eup %494 }
  0xa8   :  { %v200_v27 = vpack.c.bf16 %v495_v26, %v495_v26 }
  0xaa   :  { %260 = vmatmul.bf16.vlgmr.msra.gmra.mxu2 %v200_v27 }
 0x12d   :  { %v261_v32 = vpop.f32.mrf.mxu2 }
 0x12e   :  { %v262_v33 = vadd.f32 %v492_v31, %v261_v32 }
 0x130   :  { %496 = vtanh.f32 %v262_v33 }
 0x135   :  { %v263_v34 = vpop.f32.mrf.mxu2 }
 0x136   :  { %v497_v35 = vpop.eup %496 }
 0x137   :  { %v283_v36 = vpack.c.bf16 %v497_v35, %v497_v35 }
 0x139   :  { %343 = vmatmul.bf16.vlgmr.msra.gmra.mxu3 %v283_v36 }
 0x1bc   :  { %v344_v38 = vpop.f32.mrf.mxu3 }
 0x1bd   :  { %v345_v39 = vadd.f32 %v493_v37, %v344_v38 }
 0x1bf   :  { %498 = vtanh.f32 %v345_v39 }
 0x1c4   :  { %v346_v40 = vpop.f32.mrf.mxu3 }
 0x1c5   :  { %v499_v41 = vpop.eup %498 }
 0x1c6   :  { %v463_v42 = vmul.f32 -1.442695, %v499_v41 }
 0x1c8   :  { %500 = vpow2.f32 %v463_v42 }
 0x1ce   :  { %v501_v43 = vpop.eup %500 }
 0x1cf   :  { %v352_v44 = vadd.f32 1.0, %v501_v43 }
 0x1d1   :  { %502 = vrcp.f32 %v352_v44  ;;  %v364_v48 = vand.u32 2147483648, %v352_v44  ;;  %v362_v50 = vand.u32 2147483647, %v352_v44  ;;  %vm358_vm2 = vweird.f32 %v352_v44 }
 0x1d3   :  { %v365_v52 = vor.u32 1.1754944e-38, %v364_v48  ;;  %vm363_vm4 = vcmp.eq.f32.partialorder %v362_v50, 8.507059e+37 }
 0x1d7   :  { %v503_v45 = vpop.eup %502 }
 0x1d8   :  { %v354_v46 = vmul.f32 %v503_v45, %v352_v44  ;;  %vm359_vm1 = vweird.f32 %v503_v45 }
 0x1d9   :  { %vm360_vm3 = vmor %vm358_vm2, %vm359_vm1 }
 0x1da   :  { %v355_v47 = vsub.f32 1.0, %v354_v46 }
 0x1dc   :  { %v356_v49 = vmul.f32 %v503_v45, %v355_v47 }
 0x1de   :  { %v357_v51 = vadd.f32 %v503_v45, %v356_v49 }
 0x1e0   :  { %v361_v53 = vsel %vm360_vm3, %v503_v45, %v357_v51 }
 0x1e1   :  { %v366_v54 = vsel %vm363_vm4, %v365_v52, %v361_v53 }
 0x1e2   :  { %368 = vst.msk [vmem:[#allocation13] sm:$0xff] %vm138_vm0, %v366_v54 }
 0x1e3   :  { %379 = dma.vmem_to_hbm [thread:$0]  %s375_s19, 128, %s377_s21, [#allocation4]  }
 0x1e4   :  { %680 = dma.done.wait [#allocation4], 128  }
 0x1e5   :  { %681 = vsyncadd [#allocation4], 4294967168 }
 0x1e6   :  { %384 = vsyncpa [#allocation3], 1 }
 0x1e7   :  { %385 = vsyncpa [#allocation6], 1 }
 0x1e8   :  { %386 = vsyncpa [#allocation9], 1 }
 0x1e9   :  { %387 = vsyncpa [#allocation12], 1 }
 0x1ea   :  { %388 = vsyncpa [#allocation4], 1 }

</bundles_post_ra>
